<compile_context>
chip_gen: v7x
topology: tpu7x:2x2x1
jax: 0.10.0
libtpu: 0.0.40
codegen_flags: <defaults>
</compile_context>

<pallas_src>
import jax
import jax.numpy as jnp
from jax.experimental import pallas as pl
from jax.experimental.pallas import tpu as pltpu


def _round_up(a, m):
    return ((a + m - 1) // m) * m


def partially_linear_forward(x, beta, w1, b1, w2, b2, *, d_lin, tn=None):
    """x: (N, d_lin + d_nl) float32 -> (N, d_lin) float32 (eval-mode forward)."""
    N, D = x.shape
    d_nl = D - d_lin
    H = w1.shape[0]
    assert d_lin > 0 and d_nl > 0
    assert w1.shape == (H, d_nl)

    # ---- layout plumbing (wrapper-side, pure data movement) --------------
    # Lane-dense layout: batch on the 128-lane axis, features on sublanes.
    xt = x.T.astype(jnp.float32)                        # (D, N)
    w1_f = w1.astype(jnp.float32)                       # (H, d_nl)
    beta_c = jnp.reshape(beta, (d_lin, 1)).astype(jnp.float32)
    b1_c = jnp.reshape(b1, (H, 1)).astype(jnp.float32)
    w2_c = jnp.reshape(w2, (H, 1)).astype(jnp.float32)
    b2_f = jnp.reshape(b2, (1,)).astype(jnp.float32)    # flat scalar -> SMEM

    # ---- tile size along the batch (lane) axis ----------------------------
    if tn is None:
        TN_MAX = 32768              # ~1.5 MB useful HBM traffic per grid step
        if N <= 1024:
            tn = N                  # single full-extent block for tiny batches
        else:
            # >= 2 evenly balanced steps so both v7x TensorCores get work.
            n_steps = max(2, -(-N // TN_MAX))
            tn = min(TN_MAX, _round_up(-(-N // n_steps), 128))

    def kernel(x_ref, w1_ref, b1_ref, w2_ref, beta_ref, b2_ref, o_ref):
        x_lin = x_ref[0:d_lin, :]                        # (d_lin, tn) sublane slice
        x_nl = x_ref[d_lin:D, :]                         # (d_nl,  tn)
        # Hidden layer: (H, d_nl) @ (d_nl, tn) -> (H, tn), lane-dense result.
        h = jnp.dot(w1_ref[...], x_nl,
                    preferred_element_type=jnp.float32) + b1_ref[...]
        # LeakyReLU, negative_slope = 0.01 (PyTorch default).
        h = jnp.where(h >= 0, h, jnp.float32(0.01) * h)
        # Output layer (width 1): weighted sublane reduction, no 1-wide MXU op.
        nl = jnp.sum(w2_ref[...] * h, axis=0, keepdims=True) + b2_ref[0]  # (1, tn)
        # (d_lin, 1) * (d_lin, tn) + (1, tn) -> (d_lin, tn): full-lane store.
        o_ref[...] = beta_ref[...] * x_lin + nl

    grid = (pl.cdiv(N, tn),)
    out_t = pl.pallas_call(
        kernel,
        out_shape=jax.ShapeDtypeStruct((d_lin, N), jnp.float32),
        grid_spec=pltpu.PrefetchScalarGridSpec(
            num_scalar_prefetch=0,
            grid=grid,
            in_specs=[
                pl.BlockSpec((D, tn), lambda i: (0, i)),             # x^T tile
                pl.BlockSpec((H, d_nl), lambda i: (0, 0)),           # W1
                pl.BlockSpec((H, 1), lambda i: (0, 0)),              # b1 column
                pl.BlockSpec((H, 1), lambda i: (0, 0)),              # W2 column
                pl.BlockSpec((d_lin, 1), lambda i: (0, 0)),          # beta column
                pl.BlockSpec(memory_space=pltpu.MemorySpace.SMEM),   # b2 scalar
            ],
            out_specs=pl.BlockSpec((d_lin, tn), lambda i: (0, i)),
        ),
        compiler_params=pltpu.CompilerParams(
            dimension_semantics=("parallel",),
            vmem_limit_bytes=48 * 1024 * 1024,   # < v7x 64 MiB physical; ample on v5e/v6e
        ),
    )(xt, w1_f, b1_c, w2_c, beta_c, b2_f)
    return out_t.T                                        # (N, d_lin)


def _reference(x, beta, w1, b1, w2, b2, d_lin):
    x_lin = x[:, :d_lin]
    x_nl = x[:, d_lin:]
    h = x_nl @ w1.T + b1.reshape(1, -1)
    h = jnp.where(h >= 0, h, 0.01 * h)
    nl = h @ w2.T + b2.reshape(1, 1)
    return beta * x_lin + nl


if __name__ == "__main__":
    # Small shapes consistent with the module.
    d_lin = 4             # input_dim_linear
    d_nl = 4              # input_dim_nonlinear
    H = 32                # n_hidden

    key = jax.random.PRNGKey(0)
    kx, kb, kw1, kb1, kw2, kb2 = jax.random.split(key, 6)

    # Deterministic parameter init (synthetic; shapes match the PyTorch module).
    beta = jax.random.normal(kb, (1, d_lin), dtype=jnp.float32)
    w1 = jax.random.normal(kw1, (H, d_nl), dtype=jnp.float32) * 0.1
    b1 = jax.random.normal(kb1, (H,), dtype=jnp.float32) * 0.1
    w2 = jax.random.normal(kw2, (1, H), dtype=jnp.float32) * 0.1
    b2 = jax.random.normal(kb2, (1,), dtype=jnp.float32) * 0.1

    # Case 1: tiny batch, single full-extent tile.
    N = 8
    x = jax.random.normal(kx, (N, d_lin + d_nl), dtype=jnp.float32)
    out = partially_linear_forward(x, beta, w1, b1, w2, b2, d_lin=d_lin)
    out = jax.block_until_ready(out)
    ref = _reference(x, beta, w1, b1, w2, b2, d_lin)
    assert out.shape == (N, d_lin)
    assert jnp.allclose(out, ref, atol=1e-5, rtol=1e-5)

    # Case 2: explicit small tile -> multi-step grid with a ragged last block
    # (exercises pipelining and the masked lane writeback path).
    N2 = 300
    x2 = jax.random.normal(kx, (N2, d_lin + d_nl), dtype=jnp.float32)
    out2 = partially_linear_forward(x2, beta, w1, b1, w2, b2,
                                    d_lin=d_lin, tn=128)
    out2 = jax.block_until_ready(out2)
    ref2 = _reference(x2, beta, w1, b1, w2, b2, d_lin)
    assert out2.shape == (N2, d_lin)
    assert jnp.allclose(out2, ref2, atol=1e-5, rtol=1e-5)

    # Case 3: default tile selection for a larger batch -> >= 2 balanced grid
    # steps (megacore path) with an uneven split.
    N3 = 2500
    x3 = jax.random.normal(kx, (N3, d_lin + d_nl), dtype=jnp.float32)
    out3 = partially_linear_forward(x3, beta, w1, b1, w2, b2, d_lin=d_lin)
    out3 = jax.block_until_ready(out3)
    ref3 = _reference(x3, beta, w1, b1, w2, b2, d_lin)
    assert out3.shape == (N3, d_lin)
    assert jnp.allclose(out3, ref3, atol=1e-5, rtol=1e-5)

    print("KERNEL_OK")
</pallas_src>

<mosaic_0001>
module attributes {stable_mosaic.version = 11 : i64} {
  func.func @kernel(%arg0: i32, %arg1: memref<8x8xf32, #tpu.memory_space<vmem>>, %arg2: memref<32x4xf32, #tpu.memory_space<vmem>>, %arg3: memref<32x1xf32, #tpu.memory_space<vmem>>, %arg4: memref<32x1xf32, #tpu.memory_space<vmem>>, %arg5: memref<4x1xf32, #tpu.memory_space<vmem>>, %arg6: memref<1xf32, #tpu.memory_space<smem>>, %arg7: memref<4x8xf32, #tpu.memory_space<vmem>>) attributes {dimension_semantics = [#tpu.dimension_semantics<parallel>], iteration_bounds = array<i64: 1>, scalar_prefetch = 0 : i64, scratch_operands = 0 : i64, tpu.core_type = #tpu.core_type<tc>, window_params = [{transform_indices = @transform_0, window_bounds = array<i64: 8, 8>}, {pipeline_mode = #tpu.pipeline_mode<synchronous>, transform_indices = @transform_1, window_bounds = array<i64: 32, 4>}, {pipeline_mode = #tpu.pipeline_mode<synchronous>, transform_indices = @transform_2, window_bounds = array<i64: 32, 1>}, {pipeline_mode = #tpu.pipeline_mode<synchronous>, transform_indices = @transform_3, window_bounds = array<i64: 32, 1>}, {pipeline_mode = #tpu.pipeline_mode<synchronous>, transform_indices = @transform_4, window_bounds = array<i64: 4, 1>}, {transform_indices = @transform_5, window_bounds = array<i64: 1>}, {transform_indices = @transform_6, window_bounds = array<i64: 4, 8>}]} {
    %c0 = arith.constant 0 : index
    %c0_0 = arith.constant 0 : index
    %0 = vector.load %arg1[%c0, %c0_0] : memref<8x8xf32, #tpu.memory_space<vmem>>, vector<4x8xf32>
    %c4 = arith.constant 4 : index
    %c0_1 = arith.constant 0 : index
    %1 = vector.load %arg1[%c4, %c0_1] : memref<8x8xf32, #tpu.memory_space<vmem>>, vector<4x8xf32>
    %c0_2 = arith.constant 0 : index
    %c0_3 = arith.constant 0 : index
    %2 = vector.load %arg2[%c0_2, %c0_3] : memref<32x4xf32, #tpu.memory_space<vmem>>, vector<32x4xf32>
    %cst = arith.constant dense<0.000000e+00> : vector<32x8xf32>
    %3 = tpu.matmul %2, %1, %cst {dimension_numbers = #tpu.dot_dimension_numbers<[1], [0], [0], [1], [0, 0, 1, 1], [], []>} : vector<32x4xf32>, vector<4x8xf32>, vector<32x8xf32> -> vector<32x8xf32>
    %c0_4 = arith.constant 0 : index
    %c0_5 = arith.constant 0 : index
    %4 = vector.load %arg3[%c0_4, %c0_5] : memref<32x1xf32, #tpu.memory_space<vmem>>, vector<32x1xf32>
    %5 = vector.broadcast %4 : vector<32x1xf32> to vector<32x8xf32>
    %6 = arith.addf %3, %5 : vector<32x8xf32>
    %cst_6 = arith.constant 0.000000e+00 : f32
    %7 = vector.broadcast %cst_6 : f32 to vector<32x8xf32>
    %8 = arith.cmpf oge, %6, %7 : vector<32x8xf32>
    %cst_7 = arith.constant 0.00999999977 : f32
    %9 = vector.broadcast %cst_7 : f32 to vector<32x8xf32>
    %10 = arith.mulf %9, %6 : vector<32x8xf32>
    %11 = arith.select %8, %6, %10 : vector<32x8xi1>, vector<32x8xf32>
    %c0_8 = arith.constant 0 : index
    %c0_9 = arith.constant 0 : index
    %12 = vector.load %arg4[%c0_8, %c0_9] : memref<32x1xf32, #tpu.memory_space<vmem>>, vector<32x1xf32>
    %13 = vector.broadcast %12 : vector<32x1xf32> to vector<32x8xf32>
    %14 = arith.mulf %13, %11 : vector<32x8xf32>
    %cst_10 = arith.constant dense<0.000000e+00> : vector<8xf32>
    %15 = vector.multi_reduction <add>, %14, %cst_10 [0] : vector<32x8xf32> to vector<8xf32>
    %16 = vector.shape_cast %15 : vector<8xf32> to vector<1x8xf32>
    %c0_11 = arith.constant 0 : index
    %17 = memref.load %arg6[%c0_11] : memref<1xf32, #tpu.memory_space<smem>>
    %18 = vector.broadcast %17 : f32 to vector<1x8xf32>
    %19 = arith.addf %16, %18 : vector<1x8xf32>
    %c0_12 = arith.constant 0 : index
    %c0_13 = arith.constant 0 : index
    %20 = vector.load %arg5[%c0_12, %c0_13] : memref<4x1xf32, #tpu.memory_space<vmem>>, vector<4x1xf32>
    %21 = vector.broadcast %20 : vector<4x1xf32> to vector<4x8xf32>
    %22 = arith.mulf %21, %0 : vector<4x8xf32>
    %23 = vector.broadcast %19 : vector<1x8xf32> to vector<4x8xf32>
    %24 = arith.addf %22, %23 : vector<4x8xf32>
    %c0_14 = arith.constant 0 : index
    %c0_15 = arith.constant 0 : index
    %25 = vector.load %arg7[%c0_14, %c0_15] : memref<4x8xf32, #tpu.memory_space<vmem>>, vector<4x8xf32>
    tpu.vector_store %arg7[%c0_14, %c0_15], %24 {strides = array<i32>} : memref<4x8xf32, #tpu.memory_space<vmem>>, vector<4x8xf32>,
    return
  }
  func.func @transform_0(%arg0: i32) -> (i32, i32) {
    %c0_i32 = arith.constant 0 : i32
    %c0_i32_0 = arith.constant 0 : i32
    return %c0_i32, %arg0 : i32, i32
  }
  func.func @transform_1(%arg0: i32) -> (i32, i32) {
    %c0_i32 = arith.constant 0 : i32
    %c0_i32_0 = arith.constant 0 : i32
    %c0_i32_1 = arith.constant 0 : i32
    return %c0_i32, %c0_i32_0 : i32, i32
  }
  func.func @transform_2(%arg0: i32) -> (i32, i32) {
    %c0_i32 = arith.constant 0 : i32
    %c0_i32_0 = arith.constant 0 : i32
    %c0_i32_1 = arith.constant 0 : i32
    return %c0_i32, %c0_i32_0 : i32, i32
  }
  func.func @transform_3(%arg0: i32) -> (i32, i32) {
    %c0_i32 = arith.constant 0 : i32
    %c0_i32_0 = arith.constant 0 : i32
    %c0_i32_1 = arith.constant 0 : i32
    return %c0_i32, %c0_i32_0 : i32, i32
  }
  func.func @transform_4(%arg0: i32) -> (i32, i32) {
    %c0_i32 = arith.constant 0 : i32
    %c0_i32_0 = arith.constant 0 : i32
    %c0_i32_1 = arith.constant 0 : i32
    return %c0_i32, %c0_i32_0 : i32, i32
  }
  func.func @transform_5(%arg0: i32) -> i32 {
    %c0_i32 = arith.constant 0 : i32
    %c0_i32_0 = arith.constant 0 : i32
    return %c0_i32 : i32
  }
  func.func @transform_6(%arg0: i32) -> (i32, i32) {
    %c0_i32 = arith.constant 0 : i32
    %c0_i32_0 = arith.constant 0 : i32
    return %c0_i32, %arg0 : i32, i32
  }
}

</mosaic_0001>

<bundles_post_ra>
// kernel: tpu_custom_call.1
= control target key start
LH: loop header
LB: loop body
LE: loop exit
PB: predicated region body
PF: predicated region fallthrough
CT: control target
= control target key end

     0   :  { %vm68_vm0 = vcmask 1043456   ;;  %vm55_vm1 = vcmask 31744   ;;  %s383_s0 = inlined_call_operand.vmem [shape: f32[8,8], index: 0, kind: input, shape index: {}]   ;;  %s384_s1 = inlined_call_operand.vmem [shape: f32[32,4], index: 1, kind: input, shape index: {}]   ;;  %s385_s2 = inlined_call_operand.vmem [shape: f32[32,1], index: 2, kind: input, shape index: {}]   ;;  %s386_s3 = inlined_call_operand.vmem [shape: f32[32,1], index: 3, kind: input, shape index: {}]   ;;  %s387_s4 = inlined_call_operand.vmem [shape: f32[4,1], index: 4, kind: input, shape index: {}]   ;;  %s388_s5 = inlined_call_operand.<no memory space> [shape: f32[1], index: 5, kind: input, shape index: {}]   ;;  %s389_s6 = inlined_call_operand.hbm [shape: f32[4,8], index: 6, kind: output, shape index: {}]  }
   0x1   :  { %v26_v0 = vld [vmem:[%s383_s0 + $0x4] sm:$0xf]  ;;  %v29_v2 = vld [vmem:[%s384_s1 + $0x10] sm:$0xff]  ;;  %v28_v3 = vld [vmem:[%s384_s1 + $0x8] sm:$0xff] }
   0x2   :  { %v27_v1 = vld [vmem:[%s384_s1] sm:$0xff]  ;;  %248 = vmatprep.subr.msk.mxu0 %vm68_vm0, %v26_v0  ;;  %256 = vmatprep.subr.msk.mxu1 %vm68_vm0, %v26_v0  ;;  %v30_v4 = vld [vmem:[%s384_s1 + $0x18] sm:$0xff]  ;;  %v33_v6 = vld [vmem:[%s385_s2 + $0x10] sm:$0xff] }
   0x3   :  { %249 = vmatpush3.msk.msra.mxu0 %vm68_vm0, %v26_v0  ;;  %257 = vmatpush3.msk.msra.mxu1 %vm68_vm0, %v26_v0  ;;  %v31_v5 = vld [vmem:[%s385_s2] sm:$0xff] }
   0x4   :  { %250 = vmatprep.mubr.msk.f32.mxu0 %vm55_vm1, %v27_v1  ;;  %253 = vmatprep.mubr.msk.f32.mxu1 %vm55_vm1, %v29_v2 }
   0x5   :  { %251 = vmatmul.mubr.msk.f32.vlgmr.msra.gmra.mrb[0].mxu0 %vm55_vm1, %v28_v3  ;;  %254 = vmatmul.mubr.msk.f32.vlgmr.msra.gmra.mrb[0].mxu1 %vm55_vm1, %v30_v4 }
   0x6   :  { %12 = vsyncpa [#allocation4], 0  ;;  %v286_v7 = vmov 0   ;;  %v32_v8 = vld [vmem:[%s385_s2 + $0x8] sm:$0xff]  ;;  %v34_v9 = vld [vmem:[%s385_s2 + $0x18] sm:$0xff]  ;;  %vm197_vm6 = vcmask 64512   ;;  %v212_v57 = vstv %s388_s5 }
   0x7   :  { %260 = vset.pattern.permute.xlu0 %v286_v7  ;;  %261 = vset.pattern.permute.xlu1 %v286_v7  ;;  %v169_v10 = vld [vmem:[%s386_s3] sm:$0xff]  ;;  %v170_v11 = vld [vmem:[%s386_s3 + $0x8] sm:$0xff]  ;;  %v171_v12 = vld [vmem:[%s386_s3 + $0x10] sm:$0xff]  ;;  %s287_s25 = smov [#allocation3]   ;;  %vm222_vm7 = vcmask 60416  }
   0x8   :  { %37 = vperm.xlu0 %260, %v31_v5   ;;  %47 = vperm.xlu1 %261, %v33_v6   ;;  %v172_v13 = vld [vmem:[%s386_s3 + $0x18] sm:$0xff]  ;;  %v214_v14 = vld [vmem:[%s387_s4] sm:$0xf]  ;;  %s230_s26 = sshll.u32 %s287_s25, 4  ;;  %s231_s26 = int_to_ptr.vmem [resolvable:$true] %s230_s26 }
   0x9   :  { %v25_v56 = vld [vmem:[%s383_s0] sm:$0xf]  ;;  %s262_s27 = scalar_lea.vmem %s231_s26, 64  ;;  %p267_p1 = scmp.lt.s32.totalorder %s231_s26, %s231_s26 }
   0xa   :  { %p263_p0 = scmp.ne.s32.totalorder %s231_s26, %s262_s27  ;;  %p268_p2 = scmp.lt.s32.totalorder %s262_s27, %s262_s27 }
   0xc   :  { %42 = vperm.xlu0 %260, %v32_v8   ;;  %52 = vperm.xlu1 %261, %v34_v9   ;;  %p269_p3 = por %p268_p2, %p267_p1 }
   0xe   :  { %p270_p4 = pnand %p269_p3, %p263_p0 }
  0x10   :  { %175 = vperm.xlu0 %260, %v169_v10   ;;  %180 = vperm.xlu1 %261, %v170_v11  }
  0x14   :  { %185 = vperm.xlu0 %260, %v171_v12   ;;  %190 = vperm.xlu1 %261, %v172_v13  }
  0x18   :  { %217 = vperm.xlu0 %260, %v214_v14  }
  0x87   :  { %v38_v15 = vpop.permute.xlu0 %37  ;;  %v48_v16 = vpop.permute.xlu1 %47 }
  0x8b   :  { %v43_v17 = vpop.permute.xlu0 %42  ;;  %v53_v18 = vpop.permute.xlu1 %52 }
  0x8f   :  { %v176_v19 = vpop.permute.xlu0 %175  ;;  %v181_v26 = vpop.permute.xlu1 %180 }
  0x93   :  { %v186_v34 = vpop.permute.xlu0 %185  ;;  %v191_v41 = vpop.permute.xlu1 %190 }
  0x97   :  { %v218_v55 = vpop.permute.xlu0 %217 }
  0x98   :  { %v220_v59 = vmul.f32 %v218_v55, %v25_v56 }
  0xd8   :  { %v252_v20 = vpop.f32.mrb[0].mxu0  ;;  %v255_v21 = vpop.f32.mrb[0].mxu1 }
  0xd9   :  { %v144_v22 = vadd.f32 %v252_v20, %v43_v17  ;;  %v154_v23 = vadd.f32 %v255_v21, %v53_v18  ;;  %v138_v24 = vpop.f32.mrb[1].mxu0  ;;  %v148_v25 = vpop.f32.mrb[1].mxu1 }
  0xda   :  { %v139_v27 = vadd.f32 %v138_v24, %v38_v15  ;;  %v149_v28 = vadd.f32 %v148_v25, %v48_v16 }
  0xdb   :  { %vm158_vm2 = vcmp.ge.f32.partialorder %v144_v22, 0.0  ;;  %v162_v29 = vmul.f32 0.01, %v144_v22  ;;  %vm160_vm3 = vcmp.ge.f32.partialorder %v154_v23, 0.0  ;;  %v164_v30 = vmul.f32 0.01, %v154_v23 }
  0xdc   :  { %vm157_vm4 = vcmp.ge.f32.partialorder %v139_v27, 0.0  ;;  %v161_v31 = vmul.f32 0.01, %v139_v27  ;;  %vm159_vm5 = vcmp.ge.f32.partialorder %v149_v28, 0.0  ;;  %v163_v32 = vmul.f32 0.01, %v149_v28 }
  0xdd   :  { %v166_v33 = vsel %vm158_vm2, %v144_v22, %v162_v29  ;;  %v168_v36 = vsel %vm160_vm3, %v154_v23, %v164_v30 }
  0xde   :  { %v194_v35 = vmul.f32 %v181_v26, %v166_v33  ;;  %v165_v37 = vsel %vm157_vm4, %v139_v27, %v161_v31  ;;  %v167_v38 = vsel %vm159_vm5, %v149_v28, %v163_v32  ;;  %v196_v43 = vmul.f32 %v191_v41, %v168_v36 }
  0xdf   :  { %v193_v39 = vmul.f32 %v176_v19, %v165_v37  ;;  %v195_v40 = vmul.f32 %v186_v34, %v167_v38 }
  0xe0   :  { %v199_v42 = vsel %vm197_vm6, %v194_v35, 0.0  ;;  %v203_v48 = vsel %vm197_vm6, %v196_v43, 0.0 }
  0xe1   :  { %v198_v44 = vsel %vm197_vm6, %v193_v39, 0.0  ;;  %v201_v46 = vsel %vm197_vm6, %v195_v40, 0.0 }
  0xe2   :  { %v200_v45 = vadd.f32 %v199_v42, %v198_v44 }
  0xe4   :  { %v202_v47 = vadd.f32 %v201_v46, %v200_v45 }
  0xe6   :  { %v204_v49 = vadd.f32 %v203_v48, %v202_v47 }
  0xe8   :  { %v205_v50 = vrot.slane %v204_v49, 4 }
  0xea   :  { %v206_v51 = vadd.f32 %v205_v50, %v204_v49 }
  0xec   :  { %v207_v52 = vrot.slane %v206_v51, 2 }
  0xee   :  { %v208_v53 = vadd.f32 %v207_v52, %v206_v51 }
  0xf0   :  { %v209_v54 = vrot.slane %v208_v53, 1 }
  0xf2   :  { %v210_v58 = vadd.f32 %v209_v54, %v208_v53 }
  0xf4   :  { %v213_v60 = vadd.f32 %v212_v57, %v210_v58 }
  0xf6   :  { %v221_v61 = vadd.f32 %v220_v59, %v213_v60 }
  0xf8   :  { %223 = vst.msk [vmem:[#allocation3] sm:$0xf] %vm222_vm7, %v221_v61 }
  0xf9   :  { %273 = shalt.err (!%p270_p4)
}
  0xfa   :  { %s274_s5 = scalar_lea.hbm %s389_s6, 64 }
  0xfb   :  { %p275_p5 = scmp.ne.s32.totalorder %s389_s6, %s274_s5  ;;  %p278_p6 = scmp.lt.u32.totalorder %s274_s5, %s389_s6 }
  0xfd   :  { %p280_p7 = pnand %p278_p6, %p275_p5 }
  0xff   :  { %283 = shalt.err (!%p280_p7)
}
 0x100   :  { %233 = dma.vmem_to_hbm [thread:$0]  %s231_s26, 64, %s389_s6, [#allocation4]  }
 0x101   :  { %284 = dma.done.wait [#allocation4], 64  }
 0x102   :  { %285 = vsyncadd [#allocation4], 4294967232 }
 0x103   :  { %237 = vsyncpa [#allocation4], 1 }

</bundles_post_ra>
